<compile_context>
chip_gen: v7x
topology: tpu7x:2x2x1
jax: 0.10.0
libtpu: 0.0.40
codegen_flags: <defaults>
</compile_context>

<pallas_src>
import functools

import jax
import jax.numpy as jnp
from jax.experimental import pallas as pl
from jax.experimental.pallas import tpu as pltpu

IN_FEATURES = 11
HIDDEN = 64
OUT_FEATURES = 4
PAD = 128       # lane-dense padded width for hidden layers (and fc4's matmul)
OUT_PAD = 8     # narrow output width actually written back to HBM
MIN_TILE = 16   # bf16 sublane packing: batch tiles kept a multiple of 16


def _round_up(n, m):
    return ((n + m - 1) // m) * m


def _qnet_kernel(x_ref,
                 w1_ref, b1_ref,
                 w2_ref, b2_ref,
                 w3_ref, b3_ref,
                 w4_ref, b4_ref,
                 o_ref):
    """Fused 4-layer MLP on one (TB, 11) bf16 batch tile.

    Weights are bf16 (MXU-native); accumulation, bias add and ReLU are fp32.
    Only the first OUT_PAD output lanes are stored back to HBM.
    """
    x = x_ref[...]  # bf16 (TB, 11)

    h = jnp.dot(x, w1_ref[...], preferred_element_type=jnp.float32) + b1_ref[...]
    h = jnp.maximum(h, 0.0)

    h = jnp.dot(h.astype(jnp.bfloat16), w2_ref[...],
                preferred_element_type=jnp.float32) + b2_ref[...]
    h = jnp.maximum(h, 0.0)

    h = jnp.dot(h.astype(jnp.bfloat16), w3_ref[...],
                preferred_element_type=jnp.float32) + b3_ref[...]
    h = jnp.maximum(h, 0.0)

    h = jnp.dot(h.astype(jnp.bfloat16), w4_ref[...],
                preferred_element_type=jnp.float32) + b4_ref[...]

    # Store only the narrow output window (4 real logits + 4 pad lanes).
    o_ref[...] = h[:, :OUT_PAD].astype(o_ref.dtype)


@functools.partial(jax.jit, static_argnames=("block_b",))
def linear_qnet_forward(x, packed, *, block_b=2048):
    """x: (B, ...) -> flattened to (B, 11). packed: output of pack_params()."""
    # bf16 on the way in: halves input DMA, MXU-native dtype on all gens.
    x = x.reshape(x.shape[0], -1).astype(jnp.bfloat16)
    B, F = x.shape

    # Round the batch only up to the bf16 sublane multiple (NOT to the tile),
    # so large batches never pay an extra full-input HBM pass for padding.
    b_pad = _round_up(B, MIN_TILE)
    if b_pad != B:
        x = jnp.pad(x, ((0, b_pad - B), (0, 0)))

    # Batch tile: large (amortizes the ~0.35us per-grid-step overhead), a
    # multiple of MIN_TILE, never larger than the padded batch. For large
    # batches, cap it so the grid keeps >= 4 steps, letting the "parallel"
    # batch axis be sharded across both v7x TensorCores (no-op on v5e/v6e).
    tb = _round_up(min(block_b, b_pad), MIN_TILE)
    quarter = _round_up((b_pad + 3) // 4, MIN_TILE)
    if quarter >= 512:
        tb = min(tb, quarter)

    grid = (pl.cdiv(b_pad, tb),)  # last block may be partial; Pallas masks it

    w1, b1 = packed["w1"], packed["b1"]
    w2, b2 = packed["w2"], packed["b2"]
    w3, b3 = packed["w3"], packed["b3"]
    w4, b4 = packed["w4"], packed["b4"]

    # Weights/biases: full-array blocks with a constant index_map -> fetched
    # once and kept VMEM-resident across all batch tiles (~160 KB total).
    const = lambda a: pl.BlockSpec(a.shape, lambda i: (0,) * a.ndim)

    out_padded = pl.pallas_call(
        _qnet_kernel,
        out_shape=jax.ShapeDtypeStruct((b_pad, OUT_PAD), jnp.float32),
        grid=grid,
        in_specs=[pl.BlockSpec((tb, F), lambda i: (i, 0)),
                  const(w1), const(b1),
                  const(w2), const(b2),
                  const(w3), const(b3),
                  const(w4), const(b4)],
        out_specs=pl.BlockSpec((tb, OUT_PAD), lambda i: (i, 0)),
        compiler_params=pltpu.CompilerParams(
            dimension_semantics=("parallel",),
            # Actual footprint at tb=2048 is a few MiB; 32 MiB leaves plenty
            # of headroom under v7x's 64 MiB physical VMEM per TensorCore.
            vmem_limit_bytes=32 << 20),
    )(x, w1, b1, w2, b2, w3, b3, w4, b4)

    # Strip batch rounding and the OUT_PAD lane padding.
    return out_padded[:B, :OUT_FEATURES]


def init_params(key):
    """Deterministic init mirroring nn.Linear default (uniform +-1/sqrt(fan_in)).

    Weights stored as (in_features, out_features) — i.e. torch's W.T — so the
    forward pass is y = x @ W + b. Biases are (out_features,).
    """
    dims = [(IN_FEATURES, HIDDEN), (HIDDEN, HIDDEN),
            (HIDDEN, HIDDEN), (HIDDEN, OUT_FEATURES)]
    params = {}
    for i, (fan_in, fan_out) in enumerate(dims, start=1):
        key, kw, kb = jax.random.split(key, 3)
        bound = 1.0 / jnp.sqrt(jnp.float32(fan_in))
        params[f"w{i}"] = jax.random.uniform(
            kw, (fan_in, fan_out), jnp.float32, -bound, bound)
        params[f"b{i}"] = jax.random.uniform(
            kb, (fan_out,), jnp.float32, -bound, bound)
    return params


def pack_params(params):
    """Pad hidden/output widths to 128 lanes, cast weights to bf16.

    Zero padding is exact: padded hidden units get weight-column 0 and bias 0,
    so they stay 0 through ReLU and contribute nothing downstream. fc4 is kept
    128-wide so the final matmul is lane-dense; the kernel only stores the
    first OUT_PAD columns.
    """
    def pad_w(w, out_pad):
        in_f, out_f = w.shape
        return jnp.pad(w, ((0, 0), (0, out_pad - out_f))).astype(jnp.bfloat16)

    def pad_b(b, out_pad):
        return jnp.pad(b, (0, out_pad - b.shape[0])).reshape(1, out_pad) \
                  .astype(jnp.float32)

    packed = {
        "w1": pad_w(params["w1"], PAD), "b1": pad_b(params["b1"], PAD),
        "w2": jnp.pad(params["w2"], ((0, PAD - HIDDEN), (0, PAD - HIDDEN))
                      ).astype(jnp.bfloat16),
        "b2": pad_b(params["b2"], PAD),
        "w3": jnp.pad(params["w3"], ((0, PAD - HIDDEN), (0, PAD - HIDDEN))
                      ).astype(jnp.bfloat16),
        "b3": pad_b(params["b3"], PAD),
        "w4": jnp.pad(params["w4"], ((0, PAD - HIDDEN), (0, PAD - OUT_FEATURES))
                      ).astype(jnp.bfloat16),
        "b4": pad_b(params["b4"], PAD),
    }
    return packed


def _reference_forward(x, packed):
    """Pure-JAX reference mirroring the kernel's bf16-MXU / fp32-accumulate math."""
    h = x.reshape(x.shape[0], -1)

    def layer(h, w, b, relu):
        y = jnp.dot(h.astype(jnp.bfloat16), w,
                    preferred_element_type=jnp.float32) + b
        return jnp.maximum(y, 0.0) if relu else y

    h = layer(h, packed["w1"], packed["b1"], True)
    h = layer(h, packed["w2"], packed["b2"], True)
    h = layer(h, packed["w3"], packed["b3"], True)
    h = layer(h, packed["w4"], packed["b4"], False)
    return h[:, :OUT_FEATURES]


if __name__ == "__main__":
    key = jax.random.PRNGKey(0)
    kp, kx, kx2, kx3 = jax.random.split(key, 4)

    params = init_params(kp)
    packed = pack_params(params)

    # Small-shape check consistent with the module: flatten(x,1) -> (B, 11).
    x_small = jax.random.normal(kx, (2, IN_FEATURES), jnp.float32)
    out_small = jax.block_until_ready(linear_qnet_forward(x_small, packed))
    ref_small = _reference_forward(x_small, packed)
    assert out_small.shape == (2, OUT_FEATURES), out_small.shape
    assert jnp.allclose(out_small, ref_small, atol=2e-3, rtol=2e-3), \
        "mismatch vs JAX reference (small batch)"

    # Non-multiple-of-16 batch exercises the round-to-16 pad path.
    x_med = jax.random.normal(kx2, (300, IN_FEATURES), jnp.float32)
    out_med = jax.block_until_ready(linear_qnet_forward(x_med, packed))
    ref_med = _reference_forward(x_med, packed)
    assert out_med.shape == (300, OUT_FEATURES), out_med.shape
    assert jnp.allclose(out_med, ref_med, atol=2e-3, rtol=2e-3), \
        "mismatch vs JAX reference (medium batch)"

    # Larger batch exercises multiple grid steps and a ragged (masked)
    # last block.
    x_big = jax.random.normal(kx3, (4104, IN_FEATURES), jnp.float32)
    out_big = jax.block_until_ready(linear_qnet_forward(x_big, packed))
    ref_big = _reference_forward(x_big, packed)
    assert out_big.shape == (4104, OUT_FEATURES), out_big.shape
    assert jnp.allclose(out_big, ref_big, atol=2e-3, rtol=2e-3), \
        "mismatch vs JAX reference (multi-tile grid)"

    print("KERNEL_OK")
</pallas_src>

<mosaic_0001>
module attributes {stable_mosaic.version = 11 : i64} {
  func.func @_qnet_kernel(%arg0: i32, %arg1: memref<16x11xbf16, #tpu.memory_space<vmem>>, %arg2: memref<11x128xbf16, #tpu.memory_space<vmem>>, %arg3: memref<1x128xf32, #tpu.memory_space<vmem>>, %arg4: memref<128x128xbf16, #tpu.memory_space<vmem>>, %arg5: memref<1x128xf32, #tpu.memory_space<vmem>>, %arg6: memref<128x128xbf16, #tpu.memory_space<vmem>>, %arg7: memref<1x128xf32, #tpu.memory_space<vmem>>, %arg8: memref<128x128xbf16, #tpu.memory_space<vmem>>, %arg9: memref<1x128xf32, #tpu.memory_space<vmem>>, %arg10: memref<16x8xf32, #tpu.memory_space<vmem>>) attributes {dimension_semantics = [#tpu.dimension_semantics<parallel>], iteration_bounds = array<i64: 1>, scalar_prefetch = 0 : i64, scratch_operands = 0 : i64, tpu.core_type = #tpu.core_type<tc>, window_params = [{transform_indices = @transform_0, window_bounds = array<i64: 16, 11>}, {pipeline_mode = #tpu.pipeline_mode<synchronous>, transform_indices = @transform_1, window_bounds = array<i64: 11, 128>}, {pipeline_mode = #tpu.pipeline_mode<synchronous>, transform_indices = @transform_2, window_bounds = array<i64: 1, 128>}, {pipeline_mode = #tpu.pipeline_mode<synchronous>, transform_indices = @transform_3, window_bounds = array<i64: 128, 128>}, {pipeline_mode = #tpu.pipeline_mode<synchronous>, transform_indices = @transform_4, window_bounds = array<i64: 1, 128>}, {pipeline_mode = #tpu.pipeline_mode<synchronous>, transform_indices = @transform_5, window_bounds = array<i64: 128, 128>}, {pipeline_mode = #tpu.pipeline_mode<synchronous>, transform_indices = @transform_6, window_bounds = array<i64: 1, 128>}, {pipeline_mode = #tpu.pipeline_mode<synchronous>, transform_indices = @transform_7, window_bounds = array<i64: 128, 128>}, {pipeline_mode = #tpu.pipeline_mode<synchronous>, transform_indices = @transform_8, window_bounds = array<i64: 1, 128>}, {transform_indices = @transform_9, window_bounds = array<i64: 16, 8>}]} {
    %c0 = arith.constant 0 : index
    %c0_0 = arith.constant 0 : index
    %0 = vector.load %arg1[%c0, %c0_0] : memref<16x11xbf16, #tpu.memory_space<vmem>>, vector<16x11xbf16>
    %c0_1 = arith.constant 0 : index
    %c0_2 = arith.constant 0 : index
    %1 = vector.load %arg2[%c0_1, %c0_2] : memref<11x128xbf16, #tpu.memory_space<vmem>>, vector<11x128xbf16>
    %cst = arith.constant dense<0.000000e+00> : vector<16x128xf32>
    %2 = tpu.matmul %0, %1, %cst {dimension_numbers = #tpu.dot_dimension_numbers<[1], [0], [0], [1], [0, 0, 1, 1], [], []>} : vector<16x11xbf16>, vector<11x128xbf16>, vector<16x128xf32> -> vector<16x128xf32>
    %c0_3 = arith.constant 0 : index
    %c0_4 = arith.constant 0 : index
    %3 = vector.load %arg3[%c0_3, %c0_4] : memref<1x128xf32, #tpu.memory_space<vmem>>, vector<1x128xf32>
    %4 = vector.broadcast %3 : vector<1x128xf32> to vector<16x128xf32>
    %5 = arith.addf %2, %4 : vector<16x128xf32>
    %cst_5 = arith.constant 0.000000e+00 : f32
    %6 = vector.broadcast %cst_5 : f32 to vector<16x128xf32>
    %7 = arith.maximumf %5, %6 : vector<16x128xf32>
    %8 = arith.truncf %7 : vector<16x128xf32> to vector<16x128xbf16>
    %c0_6 = arith.constant 0 : index
    %c0_7 = arith.constant 0 : index
    %9 = vector.load %arg4[%c0_6, %c0_7] : memref<128x128xbf16, #tpu.memory_space<vmem>>, vector<128x128xbf16>
    %cst_8 = arith.constant dense<0.000000e+00> : vector<16x128xf32>
    %10 = tpu.matmul %8, %9, %cst_8 {dimension_numbers = #tpu.dot_dimension_numbers<[1], [0], [0], [1], [0, 0, 1, 1], [], []>} : vector<16x128xbf16>, vector<128x128xbf16>, vector<16x128xf32> -> vector<16x128xf32>
    %c0_9 = arith.constant 0 : index
    %c0_10 = arith.constant 0 : index
    %11 = vector.load %arg5[%c0_9, %c0_10] : memref<1x128xf32, #tpu.memory_space<vmem>>, vector<1x128xf32>
    %12 = vector.broadcast %11 : vector<1x128xf32> to vector<16x128xf32>
    %13 = arith.addf %10, %12 : vector<16x128xf32>
    %cst_11 = arith.constant 0.000000e+00 : f32
    %14 = vector.broadcast %cst_11 : f32 to vector<16x128xf32>
    %15 = arith.maximumf %13, %14 : vector<16x128xf32>
    %16 = arith.truncf %15 : vector<16x128xf32> to vector<16x128xbf16>
    %c0_12 = arith.constant 0 : index
    %c0_13 = arith.constant 0 : index
    %17 = vector.load %arg6[%c0_12, %c0_13] : memref<128x128xbf16, #tpu.memory_space<vmem>>, vector<128x128xbf16>
    %cst_14 = arith.constant dense<0.000000e+00> : vector<16x128xf32>
    %18 = tpu.matmul %16, %17, %cst_14 {dimension_numbers = #tpu.dot_dimension_numbers<[1], [0], [0], [1], [0, 0, 1, 1], [], []>} : vector<16x128xbf16>, vector<128x128xbf16>, vector<16x128xf32> -> vector<16x128xf32>
    %c0_15 = arith.constant 0 : index
    %c0_16 = arith.constant 0 : index
    %19 = vector.load %arg7[%c0_15, %c0_16] : memref<1x128xf32, #tpu.memory_space<vmem>>, vector<1x128xf32>
    %20 = vector.broadcast %19 : vector<1x128xf32> to vector<16x128xf32>
    %21 = arith.addf %18, %20 : vector<16x128xf32>
    %cst_17 = arith.constant 0.000000e+00 : f32
    %22 = vector.broadcast %cst_17 : f32 to vector<16x128xf32>
    %23 = arith.maximumf %21, %22 : vector<16x128xf32>
    %24 = arith.truncf %23 : vector<16x128xf32> to vector<16x128xbf16>
    %c0_18 = arith.constant 0 : index
    %c0_19 = arith.constant 0 : index
    %25 = vector.load %arg8[%c0_18, %c0_19] : memref<128x128xbf16, #tpu.memory_space<vmem>>, vector<128x128xbf16>
    %cst_20 = arith.constant dense<0.000000e+00> : vector<16x128xf32>
    %26 = tpu.matmul %24, %25, %cst_20 {dimension_numbers = #tpu.dot_dimension_numbers<[1], [0], [0], [1], [0, 0, 1, 1], [], []>} : vector<16x128xbf16>, vector<128x128xbf16>, vector<16x128xf32> -> vector<16x128xf32>
    %c0_21 = arith.constant 0 : index
    %c0_22 = arith.constant 0 : index
    %27 = vector.load %arg9[%c0_21, %c0_22] : memref<1x128xf32, #tpu.memory_space<vmem>>, vector<1x128xf32>
    %28 = vector.broadcast %27 : vector<1x128xf32> to vector<16x128xf32>
    %29 = arith.addf %26, %28 : vector<16x128xf32>
    %30 = vector.extract_strided_slice %29 {offsets = [0, 0], sizes = [16, 8], strides = [1, 1]} : vector<16x128xf32> to vector<16x8xf32>
    %c0_23 = arith.constant 0 : index
    %c0_24 = arith.constant 0 : index
    %31 = vector.load %arg10[%c0_23, %c0_24] : memref<16x8xf32, #tpu.memory_space<vmem>>, vector<16x8xf32>
    tpu.vector_store %arg10[%c0_23, %c0_24], %30 {strides = array<i32>} : memref<16x8xf32, #tpu.memory_space<vmem>>, vector<16x8xf32>,
    return
  }
  func.func @transform_0(%arg0: i32) -> (i32, i32) {
    %c0_i32 = arith.constant 0 : i32
    %c0_i32_0 = arith.constant 0 : i32
    return %arg0, %c0_i32 : i32, i32
  }
  func.func @transform_1(%arg0: i32) -> (i32, i32) {
    %c0_i32 = arith.constant 0 : i32
    %c0_i32_0 = arith.constant 0 : i32
    %c0_i32_1 = arith.constant 0 : i32
    return %c0_i32, %c0_i32_0 : i32, i32
  }
  func.func @transform_2(%arg0: i32) -> (i32, i32) {
    %c0_i32 = arith.constant 0 : i32
    %c0_i32_0 = arith.constant 0 : i32
    %c0_i32_1 = arith.constant 0 : i32
    return %c0_i32, %c0_i32_0 : i32, i32
  }
  func.func @transform_3(%arg0: i32) -> (i32, i32) {
    %c0_i32 = arith.constant 0 : i32
    %c0_i32_0 = arith.constant 0 : i32
    %c0_i32_1 = arith.constant 0 : i32
    return %c0_i32, %c0_i32_0 : i32, i32
  }
  func.func @transform_4(%arg0: i32) -> (i32, i32) {
    %c0_i32 = arith.constant 0 : i32
    %c0_i32_0 = arith.constant 0 : i32
    %c0_i32_1 = arith.constant 0 : i32
    return %c0_i32, %c0_i32_0 : i32, i32
  }
  func.func @transform_5(%arg0: i32) -> (i32, i32) {
    %c0_i32 = arith.constant 0 : i32
    %c0_i32_0 = arith.constant 0 : i32
    %c0_i32_1 = arith.constant 0 : i32
    return %c0_i32, %c0_i32_0 : i32, i32
  }
  func.func @transform_6(%arg0: i32) -> (i32, i32) {
    %c0_i32 = arith.constant 0 : i32
    %c0_i32_0 = arith.constant 0 : i32
    %c0_i32_1 = arith.constant 0 : i32
    return %c0_i32, %c0_i32_0 : i32, i32
  }
  func.func @transform_7(%arg0: i32) -> (i32, i32) {
    %c0_i32 = arith.constant 0 : i32
    %c0_i32_0 = arith.constant 0 : i32
    %c0_i32_1 = arith.constant 0 : i32
    return %c0_i32, %c0_i32_0 : i32, i32
  }
  func.func @transform_8(%arg0: i32) -> (i32, i32) {
    %c0_i32 = arith.constant 0 : i32
    %c0_i32_0 = arith.constant 0 : i32
    %c0_i32_1 = arith.constant 0 : i32
    return %c0_i32, %c0_i32_0 : i32, i32
  }
  func.func @transform_9(%arg0: i32) -> (i32, i32) {
    %c0_i32 = arith.constant 0 : i32
    %c0_i32_0 = arith.constant 0 : i32
    return %arg0, %c0_i32 : i32, i32
  }
}

</mosaic_0001>

<bundles_post_ra>
// kernel: linear_qnet_forward.1
= control target key start
LH: loop header
LB: loop body
LE: loop exit
PB: predicated region body
PF: predicated region fallthrough
CT: control target
= control target key end

     0   :  { %14 = vsyncpa [#allocation3], 0  ;;  %s898_s0 = inlined_call_operand.vmem [shape: bf16[16,11], index: 0, kind: input, shape index: {}]   ;;  %s899_s1 = inlined_call_operand.vmem [shape: bf16[11,128], index: 1, kind: input, shape index: {}]   ;;  %s900_s2 = inlined_call_operand.vmem [shape: f32[1,128], index: 2, kind: input, shape index: {}]   ;;  %s901_s3 = inlined_call_operand.hbm [shape: bf16[128,128], index: 3, kind: input, shape index: {}]   ;;  %s902_s4 = inlined_call_operand.vmem [shape: f32[1,128], index: 4, kind: input, shape index: {}]   ;;  %s903_s5 = inlined_call_operand.hbm [shape: bf16[128,128], index: 5, kind: input, shape index: {}]   ;;  %s904_s6 = inlined_call_operand.vmem [shape: f32[1,128], index: 6, kind: input, shape index: {}]   ;;  %s905_s7 = inlined_call_operand.hbm [shape: bf16[128,128], index: 7, kind: input, shape index: {}]   ;;  %s906_s8 = inlined_call_operand.vmem [shape: f32[1,128], index: 8, kind: input, shape index: {}]   ;;  %s907_s9 = inlined_call_operand.vmem [shape: f32[16,8], index: 9, kind: output, shape index: {}]  }
   0x1   :  { %15 = vsyncpa [#allocation5], 0  ;;  %s731_s30 = smov [#allocation4]   ;;  %s732_s11 = smov [#allocation2]  }
   0x2   :  { %s41_s10 = sshll.u32 %s731_s30, 4  ;;  %s27_s12 = sshll.u32 %s732_s11, 4  ;;  %s42_s10 = int_to_ptr.vmem [resolvable:$true] %s41_s10  ;;  %s789_s12 = int_to_ptr.vmem [resolvable:$true] %s27_s12 }
   0x3   :  { %s661_s15 = scalar_lea.hbm %s903_s5, 1024 }
   0x4   :  { %p662_p0 = scmp.ne.s32.totalorder %s903_s5, %s661_s15  ;;  %p665_p1 = scmp.lt.u32.totalorder %s661_s15, %s903_s5 }
   0x6   :  { %p667_p2 = pnand %p665_p1, %p662_p0 }
   0x8   :  { %670 = shalt.err (!%p667_p2)
}
   0x9   :  { %s671_s20 = scalar_lea.vmem %s42_s10, 1024  ;;  %p676_p4 = scmp.lt.s32.totalorder %s42_s10, %s42_s10 }
   0xa   :  { %p672_p3 = scmp.ne.s32.totalorder %s42_s10, %s671_s20  ;;  %p677_p5 = scmp.lt.s32.totalorder %s671_s20, %s671_s20 }
   0xc   :  { %p678_p6 = por %p677_p5, %p676_p4 }
   0xe   :  { %p679_p7 = pnand %p678_p6, %p672_p3 }
  0x10   :  { %682 = shalt.err (!%p679_p7)
}
  0x11   :  { %s733_s21 = smov 64   ;;  %s734_s22 = smov 4  }
  0x12   :  { %47 = dma.hbm_to_vmem [thread:$0]  %s903_s5, 1024, %s42_s10, [#allocation5], %s733_s21, %s733_s21, %s734_s22  }
  0x13   :  { %s683_s27 = scalar_lea.hbm %s901_s3, 1024 }
  0x14   :  { %p684_p8 = scmp.ne.s32.totalorder %s901_s3, %s683_s27  ;;  %p687_p9 = scmp.lt.u32.totalorder %s683_s27, %s901_s3 }
  0x16   :  { %p689_p10 = pnand %p687_p9, %p684_p8 }
  0x18   :  { %692 = shalt.err (!%p689_p10)
}
  0x19   :  { %s693_s13 = scalar_lea.vmem %s789_s12, 1024  ;;  %p698_p12 = scmp.lt.s32.totalorder %s789_s12, %s789_s12 }
  0x1a   :  { %p694_p11 = scmp.ne.s32.totalorder %s789_s12, %s693_s13  ;;  %p699_p13 = scmp.lt.s32.totalorder %s693_s13, %s693_s13 }
  0x1c   :  { %p700_p0 = por %p699_p13, %p698_p12 }
  0x1e   :  { %p701_p1 = pnand %p700_p0, %p694_p11 }
  0x20   :  { %704 = shalt.err (!%p701_p1)
}
  0x21   :  { %33 = dma.hbm_to_vmem [thread:$0]  %s901_s3, 1024, %s789_s12, [#allocation3], %s733_s21, %s733_s21, %s734_s22  }
  0x22   :  { %s735_s14 = smov [#allocation6]   ;;  %s705_s18 = scalar_lea.hbm %s905_s7, 1024 }
  0x23   :  { %s55_s15 = sshll.u32 %s735_s14, 4  ;;  %p706_p2 = scmp.ne.s32.totalorder %s905_s7, %s705_s18  ;;  %s56_s15 = int_to_ptr.vmem [resolvable:$true] %s55_s15 }
  0x24   :  { %p709_p3 = scmp.lt.u32.totalorder %s705_s18, %s905_s7 }
  0x26   :  { %p711_p4 = pnand %p709_p3, %p706_p2 }
  0x28   :  { %714 = shalt.err (!%p711_p4)
}
  0x29   :  { %s715_s25 = scalar_lea.vmem %s56_s15, 1024  ;;  %p720_p6 = scmp.lt.s32.totalorder %s56_s15, %s56_s15 }
  0x2a   :  { %p716_p5 = scmp.ne.s32.totalorder %s56_s15, %s715_s25  ;;  %p721_p7 = scmp.lt.s32.totalorder %s715_s25, %s715_s25 }
  0x2c   :  { %p722_p8 = por %p721_p7, %p720_p6 }
  0x2e   :  { %p723_p9 = pnand %p722_p8, %p716_p5 }
  0x30   :  { %726 = shalt.err (!%p723_p9)
}
  0x31   :  { %61 = dma.hbm_to_vmem [thread:$0]  %s905_s7, 1024, %s56_s15, [#allocation5], %s733_s21, %s733_s21, %s734_s22  }
  0x32   :  { %727 = dma.done.wait [#allocation3], 1024  }
  0x33   :  { %728 = vsyncadd [#allocation3], 4294966272 }
  0x34   :  { %729 = dma.done.wait [#allocation5], 2048  }
  0x35   :  { %730 = vsyncadd [#allocation5], 4294965248  ;;  %vm99_vm0 = vcmask 1044480   ;;  %v736_v0 = vmov 0.0   ;;  %vm737_vm1 = vmmov 0   ;;  %vm100_vm2 = vcmask 1045504  }
  0x36   :  { %561 = vmatprep.subr.bf16.mxu0 %v736_v0  ;;  %567 = vmatprep.subr.bf16.mxu1 %v736_v0  ;;  %v738_v1 = vmov 65535   ;;  %v635_v4 = vld [vmem:[%s899_s1] sm:$0x3f]   ;;  %v637_v6 = vld [vmem:[#allocation2] sm:$0xff]   ;;  %vm95_vm3 = vcmask 89088   ;;  %v638_v8 = vld [vmem:[#allocation2 + $0x8] sm:$0xff]  }
  0x37   :  { %563 = vmatprep.mubr.msk.bf16.mxu0 %vm737_vm1, %v736_v0  ;;  %583 = vmatprep.mubr.msk.bf16.mxu1 %vm737_vm1, %v736_v0  ;;  %v101_v2 = vsel %vm99_vm0, 4294967295, %v738_v1  ;;  %v636_v7 = vld [vmem:[%s898_s0] sm:$0xff]   ;;  %v639_v9 = vld [vmem:[#allocation2 + $0x10] sm:$0xff]   ;;  %v641_v11 = vld [vmem:[#allocation2 + $0x20] sm:$0xff]   ;;  %vm492_vm4 = vcmask 64512  }
  0x38   :  { %v102_v3 = vsel %vm100_vm2, %v101_v2, 0  ;;  %568 = vmatpush3.bf16.msra.mxu1 %v637_v6  ;;  %v640_v10 = vld [vmem:[#allocation2 + $0x18] sm:$0xff]   ;;  %v642_v12 = vld [vmem:[#allocation2 + $0x28] sm:$0xff]   ;;  %v643_v13 = vld [vmem:[#allocation2 + $0x30] sm:$0xff]  }
  0x39   :  { %v104_v5 = vand.u32 %v635_v4, %v102_v3  ;;  %569 = vmatprep.subr.bf16.mxu1 %v736_v0  ;;  %v644_v14 = vld [vmem:[#allocation2 + $0x38] sm:$0xff]   ;;  %v645_v15 = vld [vmem:[#allocation4] sm:$0xff]   ;;  %v646_v16 = vld [vmem:[#allocation4 + $0x8] sm:$0xff]  }
  0x3a   :  { %v647_v17 = vld [vmem:[#allocation4 + $0x10] sm:$0xff]   ;;  %v648_v18 = vld [vmem:[#allocation4 + $0x18] sm:$0xff]   ;;  %v649_v19 = vld [vmem:[#allocation4 + $0x20] sm:$0xff]  }
  0x3b   :  { %562 = vmatpush3.bf16.msra.mxu0 %v104_v5  ;;  %v650_v20 = vld [vmem:[#allocation4 + $0x28] sm:$0xff]   ;;  %v501_v21 = vld [vmem:[%s900_s2] ss:$0 sm:$0xff]  ;;  %v651_v31 = vld [vmem:[#allocation4 + $0x30] sm:$0xff]  }
  0x3c   :  { %587 = vmatprep.subr.bf16.mxu0 %v736_v0  ;;  %570 = vmatpush3.bf16.msra.mxu1 %v638_v8  ;;  %v652_v32 = vld [vmem:[#allocation4 + $0x38] sm:$0xff]   ;;  %v653_v33 = vld [vmem:[#allocation6] sm:$0xff]   ;;  %v654_v34 = vld [vmem:[#allocation6 + $0x8] sm:$0xff]  }
  0x3d   :  { %571 = vmatprep.subr.bf16.mxu1 %v736_v0  ;;  %v655_v35 = vld [vmem:[#allocation6 + $0x10] sm:$0xff]   ;;  %v656_v36 = vld [vmem:[#allocation6 + $0x18] sm:$0xff]   ;;  %v657_v37 = vld [vmem:[#allocation6 + $0x20] sm:$0xff]  }
  0x3e   :  { %564 = vmatmul.mubr.msk.bf16.vlgmr.msra.gmra.mrb[0].mxu0 %vm95_vm3, %v636_v7  ;;  %v658_v38 = vld [vmem:[#allocation6 + $0x28] sm:$0xff]   ;;  %v505_v39 = vld [vmem:[%s902_s4] ss:$0 sm:$0xff]  ;;  %v659_v49 = vld [vmem:[#allocation6 + $0x30] sm:$0xff]  }
  0x3f   :  { %603 = vmatprep.mubr.msk.bf16.mxu0 %vm737_vm1, %v736_v0  ;;  %588 = vmatpush3.bf16.msra.mxu0 %v645_v15  ;;  %v660_v50 = vld [vmem:[#allocation6 + $0x38] sm:$0xff]  }
  0x40   :  { %572 = vmatpush3.bf16.msra.mxu1 %v639_v9  ;;  %589 = vmatprep.subr.bf16.mxu0 %v736_v0  ;;  %v514_v51 = vld [vmem:[%s904_s6] ss:$0 sm:$0xff] }
  0x41   :  { %573 = vmatprep.subr.bf16.mxu1 %v736_v0  ;;  %v523_v61 = vld [vmem:[%s906_s8] ss:$0 sm:$0xff] }
  0x43   :  { %590 = vmatpush3.bf16.msra.mxu0 %v646_v16 }
  0x44   :  { %574 = vmatpush3.bf16.msra.mxu1 %v640_v10  ;;  %591 = vmatprep.subr.bf16.mxu0 %v736_v0 }
  0x45   :  { %575 = vmatprep.subr.bf16.mxu1 %v736_v0 }
  0x47   :  { %592 = vmatpush3.bf16.msra.mxu0 %v647_v17 }
  0x48   :  { %576 = vmatpush3.bf16.msra.mxu1 %v641_v11  ;;  %593 = vmatprep.subr.bf16.mxu0 %v736_v0 }
  0x49   :  { %577 = vmatprep.subr.bf16.mxu1 %v736_v0 }
  0x4b   :  { %594 = vmatpush3.bf16.msra.mxu0 %v648_v18 }
  0x4c   :  { %578 = vmatpush3.bf16.msra.mxu1 %v642_v12  ;;  %595 = vmatprep.subr.bf16.mxu0 %v736_v0 }
  0x4d   :  { %579 = vmatprep.subr.bf16.mxu1 %v736_v0 }
  0x4f   :  { %596 = vmatpush3.bf16.msra.mxu0 %v649_v19 }
  0x50   :  { %580 = vmatpush3.bf16.msra.mxu1 %v643_v13  ;;  %597 = vmatprep.subr.bf16.mxu0 %v736_v0 }
  0x51   :  { %581 = vmatprep.subr.bf16.mxu1 %v736_v0 }
  0x53   :  { %598 = vmatpush3.bf16.msra.mxu0 %v650_v20 }
  0x54   :  { %582 = vmatpush3.bf16.msra.mxu1 %v644_v14  ;;  %599 = vmatprep.subr.bf16.mxu0 %v736_v0 }
  0x55   :  { %607 = vmatprep.subr.bf16.mxu1 %v736_v0 }
  0x57   :  { %600 = vmatpush3.bf16.msra.mxu0 %v651_v31 }
  0x58   :  { %601 = vmatprep.subr.bf16.mxu0 %v736_v0 }
  0x5b   :  { %602 = vmatpush3.bf16.msra.mxu0 %v652_v32 }
 0x111   :  { %v140_v22 = vpop.f32.mrb[0].mxu0 }
 0x112   :  { %v141_v23 = vadd.f32 %v501_v21, %v140_v22  ;;  %v565_v24 = vpop.f32.mrb[1].mxu0 }
 0x113   :  { %v143_v25 = vpop.f32.mrb[2].mxu0 }
 0x114   :  { %v144_v26 = vadd.f32 %v501_v21, %v143_v25  ;;  %v566_v27 = vpop.f32.mrb[3].mxu0  ;;  %v147_v28 = vmax.f32 %v141_v23, 0.0 }
 0x116   :  { %v148_v29 = vmax.f32 %v144_v26, 0.0 }
 0x118   :  { %v149_v30 = vpack.c.bf16 %v148_v29, %v147_v28 }
 0x11a   :  { %584 = vmatmul.mubr.bf16.vlgmr.msra.gmra.mrb[0].mxu1 %v149_v30 }
 0x11b   :  { %623 = vmatprep.mubr.msk.bf16.mxu1 %vm737_vm1, %v736_v0  ;;  %608 = vmatpush3.bf16.msra.mxu1 %v653_v33 }
 0x11c   :  { %609 = vmatprep.subr.bf16.mxu1 %v736_v0 }
 0x11f   :  { %610 = vmatpush3.bf16.msra.mxu1 %v654_v34 }
 0x120   :  { %611 = vmatprep.subr.bf16.mxu1 %v736_v0 }
 0x123   :  { %612 = vmatpush3.bf16.msra.mxu1 %v655_v35 }
 0x124   :  { %613 = vmatprep.subr.bf16.mxu1 %v736_v0 }
 0x127   :  { %614 = vmatpush3.bf16.msra.mxu1 %v656_v36 }
 0x128   :  { %615 = vmatprep.subr.bf16.mxu1 %v736_v0 }
 0x12b   :  { %616 = vmatpush3.bf16.msra.mxu1 %v657_v37 }
 0x12c   :  { %617 = vmatprep.subr.bf16.mxu1 %v736_v0 }
 0x12f   :  { %618 = vmatpush3.bf16.msra.mxu1 %v658_v38 }
 0x130   :  { %619 = vmatprep.subr.bf16.mxu1 %v736_v0 }
 0x133   :  { %620 = vmatpush3.bf16.msra.mxu1 %v659_v49 }
 0x134   :  { %621 = vmatprep.subr.bf16.mxu1 %v736_v0 }
 0x137   :  { %622 = vmatpush3.bf16.msra.mxu1 %v660_v50 }
 0x1ed   :  { %v255_v40 = vpop.f32.mrb[0].mxu1 }
 0x1ee   :  { %v256_v41 = vadd.f32 %v505_v39, %v255_v40  ;;  %v585_v42 = vpop.f32.mrb[1].mxu1 }
 0x1ef   :  { %v258_v43 = vpop.f32.mrb[2].mxu1 }
 0x1f0   :  { %v259_v44 = vadd.f32 %v505_v39, %v258_v43  ;;  %v586_v45 = vpop.f32.mrb[3].mxu1  ;;  %v262_v46 = vmax.f32 %v256_v41, 0.0 }
 0x1f2   :  { %v263_v47 = vmax.f32 %v259_v44, 0.0 }
 0x1f4   :  { %v264_v48 = vpack.c.bf16 %v263_v47, %v262_v46 }
 0x1f6   :  { %604 = vmatmul.mubr.bf16.vlgmr.msra.gmra.mrb[4].mxu0 %v264_v48 }
 0x2c9   :  { %v370_v52 = vpop.f32.mrb[4].mxu0 }
 0x2ca   :  { %v371_v53 = vadd.f32 %v514_v51, %v370_v52  ;;  %v605_v54 = vpop.f32.mrb[5].mxu0 }
 0x2cb   :  { %v373_v55 = vpop.f32.mrb[6].mxu0 }
 0x2cc   :  { %v374_v56 = vadd.f32 %v514_v51, %v373_v55  ;;  %v606_v57 = vpop.f32.mrb[7].mxu0  ;;  %v377_v58 = vmax.f32 %v371_v53, 0.0 }
 0x2ce   :  { %v378_v59 = vmax.f32 %v374_v56, 0.0 }
 0x2d0   :  { %v379_v60 = vpack.c.bf16 %v378_v59, %v377_v58 }
 0x2d2   :  { %624 = vmatmul.mubr.bf16.vlgmr.msra.gmra.mrb[4].mxu1 %v379_v60 }
 0x3a5   :  { %v485_v62 = vpop.f32.mrb[4].mxu1 }
 0x3a6   :  { %v486_v63 = vadd.f32 %v523_v61, %v485_v62  ;;  %v625_v0 = vpop.f32.mrb[5].mxu1 }
 0x3a7   :  { %v488_v1 = vpop.f32.mrb[6].mxu1 }
 0x3a8   :  { %493 = vst.msk [vmem:[%s907_s9] sm:$0xff] %vm492_vm4, %v486_v63  ;;  %v489_v2 = vadd.f32 %v523_v61, %v488_v1  ;;  %v626_v3 = vpop.f32.mrb[7].mxu1 }
 0x3aa   :  { %494 = vst.msk [vmem:[%s907_s9 + $0x8] sm:$0xff] %vm492_vm4, %v489_v2 }
 0x3ab   :  { %499 = vsyncpa [#allocation3], 1 }
 0x3ac   :  { %500 = vsyncpa [#allocation5], 1 }

</bundles_post_ra>
